<compile_context>
chip_gen: v6e
topology: v6e:2x2x1
jax: 0.10.0
libtpu: 0.0.40
codegen_flags: <defaults>
</compile_context>

<pallas_src>
import jax
import jax.numpy as jnp
from jax.experimental import pallas as pl
from jax.experimental.pallas import tpu as pltpu


# ------------------------------ small helpers --------------------------------

def _largest_divisor_leq(n, cap):
    cap = max(1, min(cap, n))
    for d in range(cap, 0, -1):
        if n % d == 0:
            return d
    return 1


def _vmem_limit_bytes():
    """~75% of per-core VMEM (generation-aware; 64 MiB fallback covers v7x)."""
    cap = 64 * 2**20
    try:
        info = pltpu.get_tpu_info()
        cap = int(getattr(info, "vmem_capacity_bytes", cap) or cap)
    except Exception:
        pass
    return int(cap * 0.75)


# ------------------------- kernel A: ConvTranspose 2x ------------------------

def _upconv_kernel(x_ref, w_ref, b_ref, o_ref):
    # x_ref: (1, TH, W, Cin)
    # w_ref: (Cin, 4*Chalf) bf16, columns ordered ((dy*2+dx)*Chalf + oc)
    # b_ref: (1, 4*Chalf) f32
    # o_ref: (1, TH, 2, W, 2*Chalf)  -- (dy) on dim 2, (dx, oc) packed on lanes;
    #        row-major identical to the (2*TH, 2*W, Chalf) interleaved layout.
    _, TH, W, Cin = x_ref.shape
    K4 = w_ref.shape[1]
    K2 = K4 // 2

    x = x_ref[0].reshape(TH * W, Cin).astype(jnp.bfloat16)     # merge leading dims
    acc = jnp.dot(x, w_ref[...], preferred_element_type=jnp.float32)
    acc = acc + b_ref[...]                                     # f32 bias on VPU

    # dy = 0 / dy = 1 halves of the lane dim; reshapes only split the sublane
    # dim (lane width K2 preserved) -> cheap, layout-friendly.
    o_ref[0, :, 0, :, :] = acc[:, :K2].reshape(TH, W, K2).astype(o_ref.dtype)
    o_ref[0, :, 1, :, :] = acc[:, K2:].reshape(TH, W, K2).astype(o_ref.dtype)


def _conv_transpose_2x(x_nhwc, w_mat_bf16, b_row):
    """2x2 / stride-2 ConvTranspose2d.  Returns (N, 2H, 2W, Chalf) f32."""
    N, H, W, Cin = x_nhwc.shape
    Chalf = w_mat_bf16.shape[1] // 4
    # keep ~<= 12 MiB of live blocks per step (x + out, double buffered)
    rows_cap = max(1, (1 << 20) // max(W * Cin, 1))
    th = _largest_divisor_leq(H, rows_cap)
    vmem_limit = _vmem_limit_bytes()

    up_packed = pl.pallas_call(
        _upconv_kernel,
        out_shape=jax.ShapeDtypeStruct((N, H, 2, W, 2 * Chalf), jnp.float32),
        grid=(N, H // th),
        in_specs=[pl.BlockSpec((1, th, W, Cin), lambda n, t: (n, t, 0, 0)),
                  pl.BlockSpec((Cin, 4 * Chalf), lambda n, t: (0, 0)),
                  pl.BlockSpec((1, 4 * Chalf), lambda n, t: (0, 0))],
        out_specs=pl.BlockSpec((1, th, 2, W, 2 * Chalf),
                               lambda n, t: (n, t, 0, 0, 0)),
        compiler_params=pltpu.CompilerParams(
            dimension_semantics=("parallel", "parallel"),
            vmem_limit_bytes=vmem_limit),
    )(x_nhwc, w_mat_bf16, b_row)

    # Pure metadata reshape (same row-major order) -> no HBM pass.
    return up_packed.reshape(N, 2 * H, 2 * W, Chalf)


# ------------------------- kernel B: fused DoubleConv ------------------------

def _double_conv_kernel(up_c, up_t, up_b, x2_c, x2_t, x2_b,
                        w1u_ref, w1s_ref, b1_ref, w2_ref, b2_ref,
                        o_ref, up_pad, x2_pad, mid_pad):
    # up_c / x2_c : (1, TH, W, C)   centre rows of the tile
    # up_t / x2_t : (1, 2,  W, C)   2-row top halo (garbage at the top edge)
    # up_b / x2_b : (1, 2,  W, C)   2-row bottom halo (garbage at the bottom edge)
    # w1u/w1s     : (3, 3*C, Cmid)  conv1 weight split along the `cat` channels
    # w2          : (3, 3*Cmid, Cout)
    # o_ref       : (1, TH, W, Cout)
    # *_pad       : VMEM scratch holding the zero/halo-padded activations.
    t = pl.program_id(1)
    n_t = pl.num_programs(1)
    _, TH, W, Cout = o_ref.shape
    Cmid = mid_pad.shape[-1]

    def fill_pad(pad, c_ref, t_ref, b_ref, C):
        # 1-px zero column halo (conv padding in W)
        pad[:, 0:1, :] = jnp.zeros((TH + 4, 1, C), jnp.float32)
        pad[:, W + 1:W + 2, :] = jnp.zeros((TH + 4, 1, C), jnp.float32)
        # 2-row halos: neighbouring image rows, or zeros at the image border
        pad[0:2, 1:W + 1, :] = jnp.where(t > 0, t_ref[0], 0.0)
        pad[TH + 2:TH + 4, 1:W + 1, :] = jnp.where(t < n_t - 1, b_ref[0], 0.0)
        # interior
        pad[2:TH + 2, 1:W + 1, :] = c_ref[0]

    fill_pad(up_pad, up_c, up_t, up_b, up_c.shape[-1])
    fill_pad(x2_pad, x2_c, x2_t, x2_b, x2_c.shape[-1])

    def conv_contrib(pad, w_ref, nrows, cin, acc):
        # kx folded into the contraction: 3 dots of depth 3*cin.
        # TODO(synk): with channels padded to 128 this concat is layout
        # preserving; for unaligned channels it relayouts (acceptable here).
        xk = jnp.concatenate([pad[:, 0:W, :], pad[:, 1:W + 1, :],
                              pad[:, 2:W + 2, :]], axis=-1)     # (nrows+2, W, 3cin)
        xk = xk.astype(jnp.bfloat16)                            # MXU operands only
        for ky in range(3):                                     # unrolled
            acc = acc + jnp.dot(
                xk[ky:ky + nrows].reshape(nrows * W, 3 * cin),
                w_ref[ky], preferred_element_type=jnp.float32)
        return acc

    # ---- conv1 + ReLU: TH+2 rows (incl. the conv2 row-halo), stays in VMEM ----
    acc1 = jnp.zeros(((TH + 2) * W, Cmid), jnp.float32)
    acc1 = conv_contrib(up_pad, w1u_ref, TH + 2, up_c.shape[-1], acc1)
    acc1 = conv_contrib(x2_pad, w1s_ref, TH + 2, x2_c.shape[-1], acc1)
    h1 = jnp.maximum(acc1 + b1_ref[...], 0.0).reshape(TH + 2, W, Cmid)

    mid_pad[:, 0:1, :] = jnp.zeros((TH + 2, 1, Cmid), jnp.float32)
    mid_pad[:, W + 1:W + 2, :] = jnp.zeros((TH + 2, 1, Cmid), jnp.float32)
    mid_pad[:, 1:W + 1, :] = h1

    # conv1 rows that fall outside the image are conv2's zero padding
    @pl.when(t == 0)
    def _():
        mid_pad[0:1, :, :] = jnp.zeros((1, W + 2, Cmid), jnp.float32)

    @pl.when(t == n_t - 1)
    def _():
        mid_pad[TH + 1:TH + 2, :, :] = jnp.zeros((1, W + 2, Cmid), jnp.float32)

    # ---- conv2 + ReLU: TH output rows ----
    acc2 = jnp.zeros((TH * W, Cout), jnp.float32)
    acc2 = conv_contrib(mid_pad, w2_ref, TH, Cmid, acc2)
    o_ref[0] = jnp.maximum(acc2 + b2_ref[...], 0.0).reshape(TH, W, Cout).astype(o_ref.dtype)


def _dc_tile_bytes(th, w, chalf, cskip, cmid, cout):
    """Rough per-step VMEM estimate (blocks double-buffered + scratch + temps)."""
    f32, bf16 = 4, 2
    cin = chalf + cskip
    scratch = ((th + 4) * (w + 2) * cin + (th + 2) * (w + 2) * cmid) * f32
    io = 2 * f32 * (th * w * cin + 4 * w * cin + th * w * cout)
    tmp = ((th + 4) * w * 3 * cin * bf16
           + 2 * (th + 2) * w * cmid * f32
           + (th + 2) * (w + 2) * 3 * cmid * bf16
           + th * w * cout * f32)
    wgt = 2 * bf16 * 9 * cmid * (cin + cout)
    return scratch + io + tmp + wgt


def _pick_dc_row_tile(h_out, w_out, chalf, cskip, cmid, cout, budget):
    """Largest even divisor of h_out (<=32, and <=h_out/2 when possible so the
    row axis has >=2 parallel iterations) whose tile fits the VMEM budget."""
    cap = min(32, h_out if h_out < 4 else max(2, h_out // 2))
    for d in range(cap, 1, -1):
        if (d % 2 == 0 and h_out % d == 0
                and _dc_tile_bytes(d, w_out, chalf, cskip, cmid, cout) <= budget):
            return d
    return 2 if h_out % 2 == 0 else h_out   # TODO(synk): also tile W/Cout if 2 rows still overflow


def _double_conv(up, x2, w1u_bf16, w1s_bf16, b1_row, w2_bf16, b2_row):
    N, HH, WW, Chalf = up.shape
    Cskip = x2.shape[-1]
    Cmid = w1u_bf16.shape[-1]
    Cout = w2_bf16.shape[-1]

    vmem_limit = _vmem_limit_bytes()
    th = _pick_dc_row_tile(HH, WW, Chalf, Cskip, Cmid, Cout, budget=vmem_limit // 2)
    hb2 = th // 2                      # halo block index stride (row blocks of 2)
    n_row_blocks2 = HH // 2 - 1        # last valid block index for 2-row blocks

    idx_c = lambda n, t: (n, t, 0, 0)
    idx_top = lambda n, t: (n, jnp.maximum(t * hb2 - 1, 0), 0, 0)
    idx_bot = lambda n, t: (n, jnp.minimum(t * hb2 + hb2, n_row_blocks2), 0, 0)

    return pl.pallas_call(
        _double_conv_kernel,
        out_shape=jax.ShapeDtypeStruct((N, HH, WW, Cout), jnp.float32),
        grid=(N, HH // th),
        in_specs=[
            pl.BlockSpec((1, th, WW, Chalf), idx_c),
            pl.BlockSpec((1, 2, WW, Chalf), idx_top),
            pl.BlockSpec((1, 2, WW, Chalf), idx_bot),
            pl.BlockSpec((1, th, WW, Cskip), idx_c),
            pl.BlockSpec((1, 2, WW, Cskip), idx_top),
            pl.BlockSpec((1, 2, WW, Cskip), idx_bot),
            pl.BlockSpec((3, 3 * Chalf, Cmid), lambda n, t: (0, 0, 0)),
            pl.BlockSpec((3, 3 * Cskip, Cmid), lambda n, t: (0, 0, 0)),
            pl.BlockSpec((1, Cmid), lambda n, t: (0, 0)),
            pl.BlockSpec((3, 3 * Cmid, Cout), lambda n, t: (0, 0, 0)),
            pl.BlockSpec((1, Cout), lambda n, t: (0, 0)),
        ],
        out_specs=pl.BlockSpec((1, th, WW, Cout), idx_c),
        scratch_shapes=[pltpu.VMEM((th + 4, WW + 2, Chalf), jnp.float32),
                        pltpu.VMEM((th + 4, WW + 2, Cskip), jnp.float32),
                        pltpu.VMEM((th + 2, WW + 2, Cmid), jnp.float32)],
        compiler_params=pltpu.CompilerParams(
            dimension_semantics=("parallel", "parallel"),
            vmem_limit_bytes=vmem_limit),
    )(up, up, up, x2, x2, x2, w1u_bf16, w1s_bf16, b1_row, w2_bf16, b2_row)


# ------------------------------- forward pass --------------------------------

def upsample_forward(params, x1_nchw, x2_nchw):
    N, Cin, H, W = x1_nchw.shape
    Chalf = Cin // 2

    # NCHW -> NHWC (interface glue)
    x1 = jnp.transpose(x1_nchw, (0, 2, 3, 1))
    x2 = jnp.transpose(x2_nchw, (0, 2, 3, 1))

    # ConvTranspose2d(Cin, Cin//2, k=2, s=2): columns ordered ((dy*2+dx)*Chalf+oc)
    w_up_mat = jnp.transpose(params['w_up'], (0, 2, 3, 1)).reshape(Cin, 4 * Chalf)
    b_up_row = jnp.tile(params['b_up'], 4).reshape(1, 4 * Chalf)
    up = _conv_transpose_2x(x1, w_up_mat.astype(jnp.bfloat16), b_up_row)

    # DoubleConv with the torch.cat([up, x2], 1) fused in: split conv1's weight
    # along the input-channel (contraction) dim -- the concat never hits HBM.
    w1 = jnp.transpose(params['w_c1'], (2, 3, 1, 0))            # OIHW -> (ky,kx,ci,co)
    w2 = jnp.transpose(params['w_c2'], (2, 3, 1, 0))
    Cmid = w1.shape[-1]
    Cout = w2.shape[-1]
    Cskip = Cin - Chalf
    w1u = w1[:, :, :Chalf, :].reshape(3, 3 * Chalf, Cmid).astype(jnp.bfloat16)
    w1s = w1[:, :, Chalf:, :].reshape(3, 3 * Cskip, Cmid).astype(jnp.bfloat16)
    w2r = w2.reshape(3, 3 * Cmid, Cout).astype(jnp.bfloat16)

    # TODO(synk): optional deeper fusion -- compute the 2x upsample inside the
    # row-tiled DoubleConv kernel so `up` never round-trips HBM; and pad
    # channels to multiples of 128 for lane-dense stores at real U-Net widths.
    y = _double_conv(up, x2, w1u, w1s,
                     params['b_c1'].reshape(1, Cmid), w2r,
                     params['b_c2'].reshape(1, Cout))
    return jnp.transpose(y, (0, 3, 1, 2))                       # back to NCHW


# --------------------------- reference (plain JAX) ---------------------------

def ref_upsample(params, x1_nchw, x2_nchw):
    N, Cin, H, W = x1_nchw.shape
    Chalf = Cin // 2
    x1 = jnp.transpose(x1_nchw, (0, 2, 3, 1))
    up = jnp.einsum('nhwc,codk->nhwodk', x1, params['w_up'])
    up = up + params['b_up'][None, None, None, :, None, None]
    up = jnp.transpose(up, (0, 1, 4, 2, 5, 3)).reshape(N, 2 * H, 2 * W, Chalf)
    x2 = jnp.transpose(x2_nchw, (0, 2, 3, 1))
    x = jnp.concatenate([up, x2], axis=-1)

    def conv(x, w_oihw, b):
        w = jnp.transpose(w_oihw, (2, 3, 1, 0))
        y = jax.lax.conv_general_dilated(
            x, w, (1, 1), 'SAME',
            dimension_numbers=('NHWC', 'HWIO', 'NHWC'))
        return jnp.maximum(y + b, 0.0)

    x = conv(x, params['w_c1'], params['b_c1'])
    x = conv(x, params['w_c2'], params['b_c2'])
    return jnp.transpose(x, (0, 3, 1, 2))


# ------------------------------ parameter init -------------------------------

def init_params(key, in_channels, out_channels):
    ks = jax.random.split(key, 6)
    Chalf = in_channels // 2

    def u(k, shape, fan_in):
        bound = 1.0 / jnp.sqrt(jnp.float32(fan_in))
        return jax.random.uniform(k, shape, jnp.float32, -bound, bound)

    return {
        # ConvTranspose2d weight layout: (in, out, kH, kW)
        'w_up': u(ks[0], (in_channels, Chalf, 2, 2), in_channels * 4),
        'b_up': u(ks[1], (Chalf,), in_channels * 4),
        # Conv2d weight layout: (out, in, kH, kW)
        'w_c1': u(ks[2], (out_channels, in_channels, 3, 3), in_channels * 9),
        'b_c1': u(ks[3], (out_channels,), in_channels * 9),
        'w_c2': u(ks[4], (out_channels, out_channels, 3, 3), out_channels * 9),
        'b_c2': u(ks[5], (out_channels,), out_channels * 9),
    }


if __name__ == "__main__":
    key = jax.random.PRNGKey(0)
    k1, k2, kp = jax.random.split(key, 3)

    in_channels, out_channels = 8, 4
    N, H, W = 2, 8, 8
    # x1: coarse feature map (NCHW); x2: skip connection at 2x resolution, C//2 channels.
    x1 = jax.random.normal(k1, (N, in_channels, H, W), jnp.float32)
    x2 = jax.random.normal(k2, (N, in_channels // 2, 2 * H, 2 * W), jnp.float32)
    params = init_params(kp, in_channels, out_channels)

    out = jax.block_until_ready(upsample_forward(params, x1, x2))
    ref = jax.block_until_ready(ref_upsample(params, x1, x2))

    assert out.shape == (N, out_channels, 2 * H, 2 * W), out.shape
    max_err = float(jnp.max(jnp.abs(out - ref)))
    # bf16 MXU operands with f32 accumulation -> slightly looser tolerance
    assert jnp.allclose(out, ref, atol=2e-2, rtol=2e-2), max_err
    print("KERNEL_OK")
</pallas_src>

<mosaic_0001>
module attributes {stable_mosaic.version = 11 : i64} {
  func.func @_upconv_kernel(%arg0: i32, %arg1: i32, %arg2: memref<1x8x8x8xf32, #tpu.memory_space<vmem>>, %arg3: memref<8x16xbf16, #tpu.memory_space<vmem>>, %arg4: memref<1x16xf32, #tpu.memory_space<vmem>>, %arg5: memref<1x8x2x8x8xf32, #tpu.memory_space<vmem>>) attributes {dimension_semantics = [#tpu.dimension_semantics<parallel>, #tpu.dimension_semantics<parallel>], iteration_bounds = array<i64: 2, 1>, scalar_prefetch = 0 : i64, scratch_operands = 0 : i64, tpu.core_type = #tpu.core_type<tc>, window_params = [{transform_indices = @transform_0, window_bounds = array<i64: 1, 8, 8, 8>}, {pipeline_mode = #tpu.pipeline_mode<synchronous>, transform_indices = @transform_1, window_bounds = array<i64: 8, 16>}, {pipeline_mode = #tpu.pipeline_mode<synchronous>, transform_indices = @transform_2, window_bounds = array<i64: 1, 16>}, {transform_indices = @transform_3, window_bounds = array<i64: 1, 8, 2, 8, 8>}]} {
    %c0 = arith.constant 0 : index
    %c0_0 = arith.constant 0 : index
    %c0_1 = arith.constant 0 : index
    %c0_2 = arith.constant 0 : index
    %0 = vector.load %arg2[%c0, %c0_0, %c0_1, %c0_2] : memref<1x8x8x8xf32, #tpu.memory_space<vmem>>, vector<1x8x8x8xf32>
    %1 = vector.shape_cast %0 : vector<1x8x8x8xf32> to vector<8x8x8xf32>
    %2 = vector.shape_cast %1 : vector<8x8x8xf32> to vector<64x8xf32>
    %3 = arith.truncf %2 : vector<64x8xf32> to vector<64x8xbf16>
    %c0_3 = arith.constant 0 : index
    %c0_4 = arith.constant 0 : index
    %4 = vector.load %arg3[%c0_3, %c0_4] : memref<8x16xbf16, #tpu.memory_space<vmem>>, vector<8x16xbf16>
    %cst = arith.constant dense<0.000000e+00> : vector<64x16xf32>
    %5 = tpu.matmul %3, %4, %cst {dimension_numbers = #tpu.dot_dimension_numbers<[1], [0], [0], [1], [0, 0, 1, 1], [], []>} : vector<64x8xbf16>, vector<8x16xbf16>, vector<64x16xf32> -> vector<64x16xf32>
    %c0_5 = arith.constant 0 : index
    %c0_6 = arith.constant 0 : index
    %6 = vector.load %arg4[%c0_5, %c0_6] : memref<1x16xf32, #tpu.memory_space<vmem>>, vector<1x16xf32>
    %7 = vector.broadcast %6 : vector<1x16xf32> to vector<64x16xf32>
    %8 = arith.addf %5, %7 : vector<64x16xf32>
    %9 = vector.extract_strided_slice %8 {offsets = [0, 0], sizes = [64, 8], strides = [1, 1]} : vector<64x16xf32> to vector<64x8xf32>
    %10 = vector.shape_cast %9 : vector<64x8xf32> to vector<8x8x8xf32>
    %c0_7 = arith.constant 0 : index
    %c0_8 = arith.constant 0 : index
    %c0_9 = arith.constant 0 : index
    %c0_10 = arith.constant 0 : index
    %c0_11 = arith.constant 0 : index
    %11 = vector.load %arg5[%c0_7, %c0_8, %c0_9, %c0_10, %c0_11] : memref<1x8x2x8x8xf32, #tpu.memory_space<vmem>>, vector<1x8x1x8x8xf32>
    %12 = vector.shape_cast %11 : vector<1x8x1x8x8xf32> to vector<8x8x8xf32>
    %13 = vector.shape_cast %10 : vector<8x8x8xf32> to vector<1x8x1x8x8xf32>
    tpu.vector_store %arg5[%c0_7, %c0_8, %c0_9, %c0_10, %c0_11], %13 {strides = array<i32>} : memref<1x8x2x8x8xf32, #tpu.memory_space<vmem>>, vector<1x8x1x8x8xf32>,
    %14 = vector.extract_strided_slice %8 {offsets = [0, 8], sizes = [64, 8], strides = [1, 1]} : vector<64x16xf32> to vector<64x8xf32>
    %15 = vector.shape_cast %14 : vector<64x8xf32> to vector<8x8x8xf32>
    %c0_12 = arith.constant 0 : index
    %c0_13 = arith.constant 0 : index
    %c1 = arith.constant 1 : index
    %c0_14 = arith.constant 0 : index
    %c0_15 = arith.constant 0 : index
    %16 = vector.load %arg5[%c0_12, %c0_13, %c1, %c0_14, %c0_15] : memref<1x8x2x8x8xf32, #tpu.memory_space<vmem>>, vector<1x8x1x8x8xf32>
    %17 = vector.shape_cast %16 : vector<1x8x1x8x8xf32> to vector<8x8x8xf32>
    %18 = vector.shape_cast %15 : vector<8x8x8xf32> to vector<1x8x1x8x8xf32>
    tpu.vector_store %arg5[%c0_12, %c0_13, %c1, %c0_14, %c0_15], %18 {strides = array<i32>} : memref<1x8x2x8x8xf32, #tpu.memory_space<vmem>>, vector<1x8x1x8x8xf32>,
    return
  }
  func.func @transform_0(%arg0: i32, %arg1: i32) -> (i32, i32, i32, i32) {
    %c0_i32 = arith.constant 0 : i32
    %c0_i32_0 = arith.constant 0 : i32
    %c0_i32_1 = arith.constant 0 : i32
    return %arg0, %arg1, %c0_i32, %c0_i32_0 : i32, i32, i32, i32
  }
  func.func @transform_1(%arg0: i32, %arg1: i32) -> (i32, i32) {
    %c0_i32 = arith.constant 0 : i32
    %c0_i32_0 = arith.constant 0 : i32
    %c0_i32_1 = arith.constant 0 : i32
    return %c0_i32, %c0_i32_0 : i32, i32
  }
  func.func @transform_2(%arg0: i32, %arg1: i32) -> (i32, i32) {
    %c0_i32 = arith.constant 0 : i32
    %c0_i32_0 = arith.constant 0 : i32
    %c0_i32_1 = arith.constant 0 : i32
    return %c0_i32, %c0_i32_0 : i32, i32
  }
  func.func @transform_3(%arg0: i32, %arg1: i32) -> (i32, i32, i32, i32, i32) {
    %c0_i32 = arith.constant 0 : i32
    %c0_i32_0 = arith.constant 0 : i32
    %c0_i32_1 = arith.constant 0 : i32
    %c0_i32_2 = arith.constant 0 : i32
    return %arg0, %arg1, %c0_i32, %c0_i32_0, %c0_i32_1 : i32, i32, i32, i32, i32
  }
}

</mosaic_0001>

<bundles_post_ra>
// kernel: tpu_custom_call.1
= control target key start
LH: loop header
LB: loop body
LE: loop exit
PB: predicated region body
PF: predicated region fallthrough
CT: control target
= control target key end

     0   :  { %s1005_s0 = inlined_call_operand.hbm [shape: f32[2,8,8,8], index: 0, kind: input, shape index: {}]   ;;  %s1006_s1 = inlined_call_operand.hbm [shape: bf16[8,16], index: 1, kind: input, shape index: {}]   ;;  %s1007_s2 = inlined_call_operand.vmem [shape: f32[1,16], index: 2, kind: input, shape index: {}]   ;;  %s1008_s3 = inlined_call_operand.hbm [shape: f32[2,8,2,8,8], index: 3, kind: output, shape index: {}]  }
   0x1   :  { %1011 = sst [smem:[#allocation11_spill]] %s1006_s1 }
   0x2   :  { %8 = vsyncpa [#allocation3], 0 }
   0x3   :  { %10 = vsyncpa [#allocation3 + $0x1], 0 }
   0x4   :  { %11 = vsyncpa [#allocation6], 0 }
   0x5   :  { %12 = vsyncpa [#allocation4], 0 }
   0x6   :  { %14 = vsyncpa [#allocation4 + $0x1], 0  ;;  %s785_s12 = smov 0   ;;  %s787_s13 = smov 0  }
   0x7   :  { %s789_s14 = smov 0   ;;  %s791_s15 = smov 0  }
   0x8   :  { %s793_s16 = smov 0   ;;  %s795_s17 = smov 0  }
   0x9 LB: > { %s488_s18 = sadd.s32 4294967295, %s755_s17   ;;  %s489_s19 = sadd.s32 4294967294, %s755_s17   ;;  %s755_s17 = sphi %s795_s17, %s20_s17   ;;  %s751_s16 = sphi %s793_s16, %s1029_s16   ;;  %s747_s15 = sphi %s791_s15, %s1028_s15   ;;  %s743_s14 = sphi %s789_s14, %s1027_s14   ;;  %s739_s13 = sphi %s787_s13, %s1026_s13   ;;  %s735_s12 = sphi %s785_s12, %s1025_s12  }
   0xa   : > { %s41_s20 = sadd.s32 1, %s743_s14  ;;  %p48_p0 = scmp.ne.s32.totalorder %s743_s14, %s739_s13 }
   0xb   : > { %p49_p1 = scmp.eq.s32.totalorder %s755_s17, 0  ;;  %p54_p2 = scmp.ne.s32.totalorder %s739_s13, %s735_s12 }
   0xc   : > { %p823_p3 = scmp.eq.s32.totalorder %s488_s18, 0  ;;  %p122_p4 = scmp.eq.s32.totalorder %s488_s18, 1 }
   0xd   : > { %p827_p5 = por %p49_p1, %p48_p0  ;;  %p128_p6 = scmp.eq.s32.totalorder %s489_s19, 1 }
   0xe   : > { %p833_p7 = por %p823_p3, %p54_p2  ;;  %p837_p8 = por %p122_p4, %p48_p0 }
   0xf   : > { %p841_p9 = por %p128_p6, %p54_p2  ;;  %p490_p10 = scmp.ge.s32.totalorder %s755_s17, 1 }
  0x10   : > { %s1014_s23 = scalar_select %p833_p7, 1, 0 }
  0x11   : > { %s1015_s24 = scalar_select %p837_p8, 1, 0 }
  0x12   : > { %s1016_s25 = scalar_select %p841_p9, 1, 0 }
  0x13   : > { %p135_p11 = scmp.lt.s32.totalorder %s755_s17, 3  ;;  %s757_s27 = smov [#allocation5]  }
  0x14   : > { %s148_s28 = sshll.u32 %s757_s27, 4  ;;  %p560_p1 = scmp.lt.s32.totalorder %s755_s17, 2  ;;  %s149_s28 = int_to_ptr.vmem [resolvable:$true] %s148_s28 }
  0x15   : > { %p848_p13 = pnand %p490_p10, %p135_p11  ;;  %s32_s4 = sadd.s32 1, %s751_s16 }
  0x16   : > { %p857_p4 = pnand %p560_p1, %p827_p5  ;;  %p34_p6 = scmp.ge.s32.totalorder %s32_s4, 2 }
  0x17   : > { %p547_p0 = pneg %p848_p13  ;;  %s162_s5 = sand.u32 1, %s743_s14  }
  0x18   : > { %s628_s6 = scalar_lea.vmem %s149_s28, 64  ;;  %p636_p8 = scmp.lt.s32.totalorder %s149_s28, %s149_s28 }
  0x19   : > { %p863_p2 = pnand %p547_p0, %p823_p3  ;;  %p629_p11 = scmp.ne.s32.totalorder %s149_s28, %s628_s6 }
  0x1a   : > { %p637_p5 = scmp.lt.s32.totalorder %s628_s6, %s628_s6 }
  0x1b   : > { %p619_p10 = pneg %p863_p2 }
  0x1c   : > { %p638_p1 = por %p637_p5, %p636_p8 }
  0x1d   : > { %p631_p12 = pnand %p629_p11, %p619_p10 }
  0x1f   : > { %p632_p9 = pneg %p631_p12 }
  0x21   : > { %p639_p7 = pnand %p638_p1, %p632_p9 }
  0x23   : > { %642 = shalt.err (!%p639_p7)
}
  0x24   : > { %s1020_s1 = sld [smem:[#allocation11_spill]]  ;;  %s1031_s4 = smov (%p34_p6, %s32_s4), 0 }
  0x25   : > { %s493_s9 = sshll.u32 %s162_s5, 6  ;;  %s36_s10 = ssub.s32 %s751_s16, %s1031_s4 }
  0x26   : > { %p39_p12 = scmp.eq.s32.totalorder %s36_s10, 0  ;;  %s518_s11 = sshll.u32 %s751_s16, 10 }
  0x27   : > { %s174_s22 = scalar_lea.hbm %s1005_s0, %s518_s11  ;;  %s166_s27 = scalar_lea.vmem [#allocation2], %s493_s9 }
  0x28   : > { %s175_s30 = sshll.u32 %s166_s27, 4  ;;  %s163_s7 = scalar_lea.sflag [#allocation3], %s162_s5  ;;  %s176_s30 = int_to_ptr.vmem [resolvable:$true] %s175_s30 }
  0x29   : > { %s887_s6 = scalar_select %p39_p12, %s743_s14, %s41_s20  }
  0x2a   : > { %550 = dma.hbm_to_vmem [thread:$0]  (!%p863_p2), %s1020_s1, 64, %s149_s28, [#allocation6]  }
  0x2b   : > { %p645_p7 = pneg %p857_p4  ;;  %s656_s28 = scalar_lea.vmem %s176_s30, 1024 }
  0x2c   : > { %p657_p8 = scmp.ne.s32.totalorder %s176_s30, %s656_s28  ;;  %s758_s8 = smov [#allocation2]  }
  0x2d   : > { %s661_s10 = sshll.u32 %s758_s8, 4  ;;  %s662_s10 = int_to_ptr.vmem [resolvable:$false] %s661_s10 }
  0x2e   : > { %p659_p9 = pnand %p657_p8, %p645_p7  ;;  %s663_s1 = scalar_lea.vmem %s662_s10, 2048 }
  0x2f   : > { %p664_p2 = scmp.lt.s32.totalorder %s176_s30, %s662_s10  ;;  %p665_p6 = scmp.lt.s32.totalorder %s663_s1, %s656_s28 }
  0x30   : > { %p660_p0 = pneg %p659_p9 }
  0x31   : > { %p666_p10 = por %p665_p6, %p664_p2 }
  0x33   : > { %p667_p11 = pnand %p666_p10, %p660_p0 }
  0x35   : > { %670 = shalt.err (!%p667_p11)
}
  0x36   : > { %s759_s9 = smov 128   ;;  %s760_s20 = smov 8  }
  0x37   : > { %554 = dma.hbm_to_vmem [thread:$0]  (!%p857_p4), %s174_s22, 1024, %s176_s30, %s163_s7, %s759_s9, %s759_s9, %s760_s20  }
  0x38   : > { %187 = sbr.rel (%p848_p13) target bundleno = 407 (0x197), region = 32  ;;  %s896_s5 = sand.u32 (!%p848_p13), 1, %s739_s13  }
  0x39   : > { %s497_s11 = sshll.u32 (!%p848_p13), %s896_s5, 6  ;;  %s190_s18 = scalar_lea.sflag (!%p848_p13), [#allocation3], %s896_s5 }
  0x3a   : > { %s193_s1 = scalar_lea.vmem (!%p848_p13), [#allocation2], %s497_s11  ;;  %p1021_p5 = scmp.ne.s32.totalorder (!%p848_p13), %s1014_s23, 0 }
  0x3d   : > { %722 = dma.done.wait (%p1021_p5), %s190_s18, 1024  }
  0x3e   : > { %724 = vsyncadd (%p1021_p5), %s190_s18, 4294966272 }
  0x3f   : > { %726 = dma.done.wait (%p823_p3), [#allocation6], 64  }
  0x40   : > { %728 = vsyncadd (%p823_p3), [#allocation6], 4294967232  ;;  %vm256_vm0 = vcmask 1043456   ;;  %v235_v0 = vld [vmem:[#allocation5] sm:$0xf]  ;;  %v224_v2 = vld [vmem:[%s193_s1 + $0x8] sm:$0xff] }
  0x41   : > { %v223_v1 = vld [vmem:[%s193_s1] sm:$0xff]  ;;  %vm243_vm1 = vcmask 64512   ;;  %537 = vmatprep.subr.msk.bf16.mxu0 %vm256_vm0, %v235_v0  ;;  %538 = vmatprep.subr.msk.bf16.mxu1 %vm256_vm0, %v235_v0  ;;  %v258_v3 = vsel %vm256_vm0, %v235_v0, 0  ;;  %v228_v6 = vld [vmem:[%s193_s1 + $0x28] sm:$0xff]  ;;  %v225_v7 = vld [vmem:[%s193_s1 + $0x10] sm:$0xff]  ;;  %s499_s21 = sshll.u32 %s896_s5, 7 }
  0x42   : > { %v231_v4 = vpack.c.bf16 %v224_v2, %v223_v1  ;;  %v227_v5 = vld [vmem:[%s193_s1 + $0x20] sm:$0xff]  ;;  %526 = vmatpush3.bf16.msra.mxu0 %v258_v3  ;;  %536 = vmatpush3.bf16.msra.mxu1 %v258_v3  ;;  %v226_v9 = vld [vmem:[%s193_s1 + $0x18] sm:$0xff]  ;;  %v229_v10 = vld [vmem:[%s193_s1 + $0x30] sm:$0xff]  ;;  %s916_s29 = scalar_lea.vmem [#allocation7], %s499_s21  ;;  %s761_s19 = smov 120  }
  0x43   : > { %v233_v8 = vpack.c.bf16 %v228_v6, %v227_v5  ;;  %v230_v11 = vld [vmem:[%s193_s1 + $0x38] sm:$0xff]  ;;  %v232_v12 = vpack.c.bf16 %v226_v9, %v225_v7  ;;  %v500_v14 = vld [vmem:[%s1007_s2] ss:$0 sm:$0xff]  ;;  %s519_s22 = sshll.u32 %s747_s15, 11  ;;  %s391_s27 = sshll.u32 %s916_s29, 4  ;;  %s953_s27 = int_to_ptr.vmem [resolvable:$true] %s391_s27 }
  0x44   : > { %527 = vmatprep.mubr.msk.bf16.mxu0 %vm243_vm1, %v231_v4  ;;  %v234_v13 = vpack.c.bf16 %v230_v11, %v229_v10  ;;  %s951_s28 = scalar_lea.hbm %s1008_s3, %s519_s22  ;;  %s375_s15 = scalar_lea.sflag [#allocation4], %s896_s5 }
  0x45   : > { %531 = vmatprep.mubr.msk.bf16.mxu1 %vm243_vm1, %v233_v8  ;;  %528 = vmatmul.mubr.msk.bf16.vlgmr.msra.gmra.mxu0 %vm243_vm1, %v232_v12  ;;  %s671_s8 = scalar_lea.vmem %s953_s27, 2048  ;;  %p1022_p13 = scmp.ne.s32.totalorder %s1015_s24, 0 }
  0x46   : > { %532 = vmatmul.mubr.msk.bf16.vlgmr.msra.gmra.mxu1 %vm243_vm1, %v234_v13  ;;  %p672_p3 = scmp.ne.s32.totalorder %s953_s27, %s671_s8  ;;  %s762_s10 = smov [#allocation7]  }
  0x47   : > { %s675_s9 = sshll.u32 %s762_s10, 4  ;;  %s676_s9 = int_to_ptr.vmem [resolvable:$false] %s675_s9 }
  0x48   : > { %p673_p4 = pnand %p672_p3, %p1022_p13  ;;  %s677_s20 = scalar_lea.vmem %s676_s9, 4096 }
  0x49   : > { %p678_p12 = scmp.lt.s32.totalorder %s953_s27, %s676_s9  ;;  %p679_p7 = scmp.lt.s32.totalorder %s677_s20, %s671_s8 }
  0x4a   : > { %p674_p1 = pneg %p673_p4 }
  0x4b   : > { %p680_p8 = por %p679_p7, %p678_p12 }
  0x4d   : > { %p681_p9 = pnand %p680_p8, %p674_p1 }
 0x105   : > { %v529_v15 = vpop.f32.mrf.mxu0 }
 0x106   : > { %v533_v16 = vpop.f32.mrf.mxu1  ;;  %v303_v17 = vadd.f32 %v529_v15, %v500_v14 }
 0x107   : > { %v319_v18 = vadd.f32 %v533_v16, %v500_v14  ;;  %v294_v19 = vpop.f32.mrf.mxu0 }
 0x108   : > { %v310_v20 = vpop.f32.mrf.mxu1  ;;  %327 = vst.msk [vmem:[%s916_s29 + $0x20] sm:$0xff] %vm243_vm1, %v303_v17  ;;  %v295_v21 = vadd.f32 %v500_v14, %v294_v19  ;;  %345 = vrot.lane.b32.xlu1 %v303_v17, %s761_s19 }
 0x109   : > { %331 = vst.msk [vmem:[%s916_s29 + $0x60] sm:$0xff] %vm243_vm1, %v319_v18  ;;  %v311_v22 = vadd.f32 %v500_v14, %v310_v20  ;;  %v530_v23 = vpop.f32.mrf.mxu0 }
 0x10a   : > { %v534_v24 = vpop.f32.mrf.mxu1  ;;  %325 = vst.msk [vmem:[%s916_s29] sm:$0xff] %vm243_vm1, %v295_v21  ;;  %v306_v25 = vadd.f32 %v530_v23, %v500_v14  ;;  %341 = vrot.lane.b32.xlu0 %v295_v21, %s761_s19 }
 0x10b   : > { %329 = vst.msk [vmem:[%s916_s29 + $0x40] sm:$0xff] %vm243_vm1, %v311_v22  ;;  %v322_v26 = vadd.f32 %v534_v24, %v500_v14  ;;  %v297_v27 = vpop.f32.mrf.mxu0 }
 0x10c   : > { %v313_v28 = vpop.f32.mrf.mxu1  ;;  %328 = vst.msk [vmem:[%s916_s29 + $0x30] sm:$0xff] %vm243_vm1, %v306_v25  ;;  %v298_v29 = vadd.f32 %v500_v14, %v297_v27  ;;  %347 = vrot.lane.b32.xlu1 %v306_v25, %s761_s19 }
 0x10d   : > { %332 = vst.msk [vmem:[%s916_s29 + $0x70] sm:$0xff] %vm243_vm1, %v322_v26  ;;  %v314_v30 = vadd.f32 %v500_v14, %v313_v28 }
 0x10e   : > { %326 = vst.msk [vmem:[%s916_s29 + $0x10] sm:$0xff] %vm243_vm1, %v298_v29  ;;  %349 = vrot.lane.b32.xlu0 %v311_v22, %s761_s19 }
 0x10f   : > { %330 = vst.msk [vmem:[%s916_s29 + $0x50] sm:$0xff] %vm243_vm1, %v314_v30 }
 0x110   : > { %351 = vrot.lane.b32.xlu1 %v314_v30, %s761_s19 }
 0x112   : > { %343 = vrot.lane.b32.xlu0 %v298_v29, %s761_s19 }
 0x114   : > { %355 = vrot.lane.b32.xlu1 %v322_v26, %s761_s19 }
 0x116   : > { %353 = vrot.lane.b32.xlu0 %v319_v18, %s761_s19 }
 0x17a   : > { %v346_v31 = vpop.permute.xlu1 %345 }
 0x17b   : > { %507 = vst.msk [vmem:[%s916_s29 + $0x28] sm:$0xff] %vm243_vm1, %v346_v31 }
 0x17c   : > { %v342_v32 = vpop.permute.xlu0 %341 }
 0x17d   : > { %505 = vst.msk [vmem:[%s916_s29 + $0x8] sm:$0xff] %vm243_vm1, %v342_v32 }
 0x17e   : > { %v348_v33 = vpop.permute.xlu1 %347 }
 0x17f   : > { %508 = vst.msk [vmem:[%s916_s29 + $0x38] sm:$0xff] %vm243_vm1, %v348_v33 }
 0x180   : > { %v350_v34 = vpop.permute.xlu0 %349 }
 0x181   : > { %509 = vst.msk [vmem:[%s916_s29 + $0x48] sm:$0xff] %vm243_vm1, %v350_v34 }
 0x182   : > { %v352_v35 = vpop.permute.xlu1 %351 }
 0x183   : > { %510 = vst.msk [vmem:[%s916_s29 + $0x58] sm:$0xff] %vm243_vm1, %v352_v35 }
 0x184   : > { %v344_v36 = vpop.permute.xlu0 %343 }
 0x185   : > { %506 = vst.msk [vmem:[%s916_s29 + $0x18] sm:$0xff] %vm243_vm1, %v344_v36 }
 0x186   : > { %v356_v37 = vpop.permute.xlu1 %355 }
 0x187   : > { %512 = vst.msk [vmem:[%s916_s29 + $0x78] sm:$0xff] %vm243_vm1, %v356_v37 }
 0x188   : > { %v354_v38 = vpop.permute.xlu0 %353 }
 0x189   : > { %511 = vst.msk [vmem:[%s916_s29 + $0x68] sm:$0xff] %vm243_vm1, %v354_v38 }
 0x18a   : > { %684 = shalt.err (!%p681_p9)
}
 0x18b   : > { %s685_s11 = scalar_lea.hbm %s951_s28, 2048  ;;  %s689_s21 = scalar_lea.hbm %s1008_s3, 4096 }
 0x18c   : > { %p686_p0 = scmp.ne.s32.totalorder %s951_s28, %s685_s11  ;;  %p690_p10 = scmp.lt.s32.totalorder %s951_s28, %s1008_s3 }
 0x18d   : > { %p691_p11 = scmp.lt.s32.totalorder %s689_s21, %s685_s11 }
 0x18e   : > { %p687_p2 = pnand %p686_p0, %p1022_p13 }
 0x18f   : > { %p692_p5 = por %p691_p11, %p690_p10 }
 0x190   : > { %p688_p6 = pneg %p687_p2 }
 0x192   : > { %p693_p3 = pnand %p692_p5, %p688_p6 }
 0x194   : > { %696 = shalt.err (!%p693_p3)
}
 0x195   : > { %s763_s29 = smov 128   ;;  %s764_s19 = smov 8  }
 0x196   : > { %545 = dma.vmem_to_hbm [thread:$0]  (%p1022_p13), %s953_s27, 2048, %s951_s28, %s375_s15, %s763_s29, %s763_s29, %s764_s19  }
 0x197 PF: > { %s406_s22 = sand.u32 1, %s735_s12   ;;  %p1023_p4 = scmp.ne.s32.totalorder %s1016_s25, 0 }
 0x198   : > { %p1024_p1 = scmp.ge.s32.totalorder %s755_s17, 2  ;;  %s407_s30 = scalar_lea.sflag [#allocation4], %s406_s22 }
 0x19a   : > { %p556_p12 = pnand %p1024_p1, %p1023_p4 }
 0x19c   : > { %p557_p7 = pneg %p556_p12 }
 0x19e   : > { %730 = dma.done.wait (%p557_p7), %s407_s30, 2048  }
 0x19f   : > { %732 = vsyncadd (%p557_p7), %s407_s30, 4294965248  ;;  %s20_s17 = sadd.s32 1, %s755_s17   ;;  %s1025_s12 = smov %s739_s13 }
 0x1a0   : > { %p17_p8 = scmp.ge.s32.totalorder %s20_s17, 4   ;;  %s1026_s13 = smov %s743_s14 }
 0x1a1   : > { %s1027_s14 = smov %s887_s6  ;;  %s1028_s15 = smov %s751_s16 }
 0x1a2   : > { %s1029_s16 = smov %s1031_s4  ;;  %19 = sbr.rel (!%p17_p8) target bundleno = 9 (0x9), region = 82 }
 0x1a7   :  { %412 = vsyncpa [#allocation3], 1 }
 0x1a8   :  { %414 = vsyncpa [#allocation3 + $0x1], 1 }
 0x1a9   :  { %415 = vsyncpa [#allocation6], 1 }
 0x1aa   :  { %416 = vsyncpa [#allocation4], 1 }
 0x1ab   :  { %418 = vsyncpa [#allocation4 + $0x1], 1 }

</bundles_post_ra>
